<compile_context>
chip_gen: v7x
topology: tpu7x:2x2x1
jax: 0.10.0
libtpu: 0.0.40
codegen_flags: <defaults>
</compile_context>

<pallas_src>
import numpy as np
import jax
import jax.numpy as jnp
from jax.experimental import pallas as pl
from jax.experimental.pallas import tpu as pltpu


def _round_up(n, m):
    return ((n + m - 1) // m) * m


# ----------------------------- Pallas kernel --------------------------------
def ring_gemm_kernel(gi_ref, x_ref, out_ref):
    """One grid step = (one batch element) x (one chunk of TE edges).

    gi_ref : (1, 1, 1, 5*TE) int32 -- flattened neighbor indices (k-major),
                                      indices into the padded edge table.
    x_ref  : (1, C, P)       f32/bf16 -- padded feature table (col 0 = zero pad),
                                         resident across the chunk axis.
    out_ref: (1, 5*C, TE)    f32   -- rows [0:C]=f0, [C:2C]=f1+f3, [2C:3C]=f2+f4,
                                      [3C:4C]=|f1-f3|, [4C:5C]=|f2-f4|.
    """
    xp = x_ref[0]                         # (C, P)
    gi = gi_ref[0, 0]                     # (1, 5*TE) int32
    P = xp.shape[1]
    KTE = gi.shape[1]
    TE = KTE // 5

    # Lane-constant iota: the broadcast happens inside the compare (no (P,TE)
    # int32 materialization per step).
    iota = jax.lax.broadcasted_iota(jnp.int32, (P, 1), 0)
    onehot = (iota == gi).astype(xp.dtype)                      # (P, 5*TE)

    # Single fused MXU gather: E (lanes) stays the fast axis everywhere.
    f = jnp.dot(xp, onehot, preferred_element_type=jnp.float32)  # (C, 5*TE)

    f0 = f[:, 0 * TE:1 * TE]
    f1 = f[:, 1 * TE:2 * TE]
    f2 = f[:, 2 * TE:3 * TE]
    f3 = f[:, 3 * TE:4 * TE]
    f4 = f[:, 4 * TE:5 * TE]

    # One dense (5*C, TE) slab store (no per-k partial-sublane stores).
    out_ref[0] = jnp.concatenate(
        [f0, f1 + f3, f2 + f4, jnp.abs(f1 - f3), jnp.abs(f2 - f4)],
        axis=0).astype(out_ref.dtype)


# ------------------------------ wrapper --------------------------------------
def _default_vmem_limit_bytes():
    # Safe on all gens: ~half of physical VMEM, clamped to [32, 64] MiB
    # (v5e/v6e: 128 MiB physical -> 64 MiB; v7x: 64 MiB physical -> 32 MiB).
    try:
        cap = int(pltpu.get_tpu_info().vmem_capacity_bytes)
        return max(32 * 1024 * 1024, min(64 * 1024 * 1024, cap // 2))
    except Exception:
        return 48 * 1024 * 1024


def _choose_edge_chunk(E, C, P, itemsize, vmem_limit_bytes):
    """Largest lane-aligned TE whose working set fits ~60% of the vmem limit."""
    budget = int(vmem_limit_bytes * 0.6)
    fixed = 2 * C * P * itemsize                   # x double buffer
    per_te = (5 * P * itemsize                     # fused one-hot (P, 5*TE)
              + 2 * 5 * C * 4                      # output double buffer (f32)
              + 2 * 5 * C * 4)                     # matmul result + sym-fn temps
    te = (budget - fixed) // max(per_te, 1)
    te = max(128, min(1024, (te // 128) * 128))
    te = min(te, _round_up(E, 128))
    return int(te)


def ring_forward_pallas(x, G, *, edge_chunk=None, compute_dtype=jnp.float32,
                        vmem_limit_bytes=None, lane_dense_output=False):
    """x: (B, C, E) features, G: (B, E, 5) neighbor table (as built by pad_gemm).
    Returns (B, C, E, 5) (PyTorch layout), or (B, 5, C, E) if lane_dense_output."""
    B, C, E = x.shape
    K = G.shape[-1]
    assert K == 5

    itemsize = jnp.dtype(compute_dtype).itemsize
    vmem_limit_bytes = vmem_limit_bytes or _default_vmem_limit_bytes()
    P = _round_up(E + 1, 128)              # padded gather-table width (MXU contraction)

    if edge_chunk is not None:
        TE = _round_up(edge_chunk, 128)
        TE = min(TE, _round_up(E, 128))
    else:
        TE = _choose_edge_chunk(E, C, P, itemsize, vmem_limit_bytes)
    EP = _round_up(E, TE)
    num_chunks = EP // TE

    # v7x megacore: keep >= 2 grid steps when B == 1 and there is enough work.
    if B == 1 and num_chunks == 1 and EP > 128:
        TE = max(128, ((EP // 2) // 128) * 128)
        EP = _round_up(E, TE)
        num_chunks = EP // TE

    # Padded feature table (B, C, P): column 0 is the zero "padding edge",
    # columns 1..E are the real edges, the rest is zero and never indexed.
    x_tab = jnp.zeros((B, C, P), compute_dtype).at[:, :, 1:E + 1].set(
        x.astype(compute_dtype))

    # Indices: int32 (+1 for the pad edge), neighbors-first, pad extra edges
    # with 0 (-> zero column), then flatten per chunk as k-major (1, 5*TE) rows.
    gi = jnp.transpose(G.astype(jnp.int32) + 1, (0, 2, 1))            # (B, 5, E)
    gi = jnp.pad(gi, ((0, 0), (0, 0), (0, EP - E)))                   # (B, 5, EP)
    gi = gi.reshape(B, K, num_chunks, TE).transpose(0, 2, 1, 3)       # (B, nc, 5, TE)
    gi = gi.reshape(B, num_chunks, 1, K * TE)                         # (B, nc, 1, 5*TE)

    # Cost estimate: x_tab is DMA'd once per batch element (index_map ignores
    # the chunk axis), gi + outputs once.
    flops = int(2 * B * C * P * K * EP)
    bytes_accessed = int(gi.size * 4 + x_tab.size * itemsize + B * K * C * EP * 4)

    out = pl.pallas_call(
        ring_gemm_kernel,
        out_shape=jax.ShapeDtypeStruct((B, K * C, EP), jnp.float32),
        grid_spec=pltpu.PrefetchScalarGridSpec(
            num_scalar_prefetch=0,
            grid=(B, num_chunks),
            in_specs=[
                pl.BlockSpec((1, 1, 1, K * TE), lambda b, c: (b, c, 0, 0)),
                # Feature table stays resident across the chunk axis.
                pl.BlockSpec((1, C, P), lambda b, c: (b, 0, 0)),
            ],
            out_specs=pl.BlockSpec((1, K * C, TE), lambda b, c: (b, 0, c)),
        ),
        compiler_params=pltpu.CompilerParams(
            dimension_semantics=("parallel", "parallel"),
            vmem_limit_bytes=int(vmem_limit_bytes)),
        cost_estimate=pl.CostEstimate(flops=flops, transcendentals=0,
                                      bytes_accessed=bytes_accessed),
    )(gi, x_tab)

    out = out.reshape(B, K, C, EP)[:, :, :, :E]     # (B, 5, C, E) lane-dense
    if lane_dense_output:
        return out
    # PyTorch layout (B, C, E, 5). NOTE: this relayout is lane-sparse; prefer
    # lane_dense_output=True and fusing into the downstream 1x5 conv/einsum.
    return jnp.transpose(out, (0, 2, 3, 1))


# ------------------------------ host-side glue -------------------------------
def pad_gemm(gemm_edges, edges_count, xsz):
    """gemm_edges: (edges_count, 4) int -> (1, xsz, 5) float, as in Ring.pad_gemm."""
    g = jnp.concatenate(
        [jnp.arange(edges_count, dtype=jnp.float32)[:, None],
         gemm_edges.astype(jnp.float32)], axis=1)                 # (ec, 5)
    g = jnp.pad(g, ((0, xsz - edges_count), (0, 0)))              # (xsz, 5)
    return g[None]                                                # (1, xsz, 5)


def ref_ring(x, G):
    """Pure-JAX reference of create_GeMM for correctness checking."""
    B, C, E = x.shape
    xp = jnp.concatenate([jnp.zeros((B, C, 1), x.dtype), x], axis=2)   # (B,C,E+1)
    gi = (G + 1.0).astype(jnp.int32)                                   # (B,E,5)
    f = jax.vmap(lambda xb, gb: xb[:, gb])(xp, gi)                     # (B,C,E,5)
    x1 = f[:, :, :, 1] + f[:, :, :, 3]
    x2 = f[:, :, :, 2] + f[:, :, :, 4]
    x3 = jnp.abs(f[:, :, :, 1] - f[:, :, :, 3])
    x4 = jnp.abs(f[:, :, :, 2] - f[:, :, :, 4])
    return jnp.stack([f[:, :, :, 0], x1, x2, x3, x4], axis=3)


if __name__ == "__main__":
    key = jax.random.PRNGKey(0)
    B, C_in, C_out, E, K = 2, 4, 8, 16, 5

    # Deterministic parameter init (Conv2d(in=4, out=8, kernel=(1,5)) + bias).
    # They exist in __init__ but are NOT used by Ring.forward (faithful to PyTorch).
    kw, kb, kx, kg0, kg1 = jax.random.split(key, 5)
    conv_w = jax.random.normal(kw, (C_out, C_in, 1, K), jnp.float32) * 0.1  # unused
    conv_b = jax.random.normal(kb, (C_out,), jnp.float32) * 0.1             # unused

    # Edge features: (B, C, E, 1), as fed to Ring.forward before squeeze(-1).
    x = jax.random.normal(kx, (B, C_in, E, 1), jnp.float32)
    x_sq = jnp.squeeze(x, -1)                                               # (B,C,E)

    # Synthetic meshes: mesh 0 has E edges, mesh 1 has E-3 (exercises padding).
    ec0, ec1 = E, E - 3
    ge0 = jax.random.randint(kg0, (ec0, 4), -1, ec0)   # -1 = boundary (pad slot)
    ge1 = jax.random.randint(kg1, (ec1, 4), -1, ec1)
    G = jnp.concatenate([pad_gemm(ge0, ec0, E), pad_gemm(ge1, ec1, E)], axis=0)

    out = ring_forward_pallas(x_sq, G)
    out = jax.block_until_ready(out)

    ref = ref_ring(x_sq, G)
    assert out.shape == (B, C_in, E, K), out.shape
    np.testing.assert_allclose(np.asarray(out), np.asarray(ref), rtol=1e-6, atol=1e-6)

    print("KERNEL_OK")
</pallas_src>

<mosaic_0001>
module attributes {stable_mosaic.version = 11 : i64} {
  func.func @ring_gemm_kernel(%arg0: i32, %arg1: i32, %arg2: memref<1x1x1x640xi32, #tpu.memory_space<vmem>>, %arg3: memref<1x4x128xf32, #tpu.memory_space<vmem>>, %arg4: memref<1x20x128xf32, #tpu.memory_space<vmem>>) attributes {dimension_semantics = [#tpu.dimension_semantics<parallel>, #tpu.dimension_semantics<parallel>], iteration_bounds = array<i64: 2, 1>, scalar_prefetch = 0 : i64, scratch_operands = 0 : i64, tpu.core_type = #tpu.core_type<tc>, window_params = [{transform_indices = @transform_0, window_bounds = array<i64: 1, 1, 1, 640>}, {transform_indices = @transform_1, window_bounds = array<i64: 1, 4, 128>}, {transform_indices = @transform_2, window_bounds = array<i64: 1, 20, 128>}]} {
    %c0 = arith.constant 0 : index
    %c0_0 = arith.constant 0 : index
    %c0_1 = arith.constant 0 : index
    %0 = vector.load %arg3[%c0, %c0_0, %c0_1] : memref<1x4x128xf32, #tpu.memory_space<vmem>>, vector<1x4x128xf32>
    %1 = vector.shape_cast %0 : vector<1x4x128xf32> to vector<4x128xf32>
    %c0_2 = arith.constant 0 : index
    %c0_3 = arith.constant 0 : index
    %c0_4 = arith.constant 0 : index
    %c0_5 = arith.constant 0 : index
    %2 = vector.load %arg2[%c0_2, %c0_3, %c0_4, %c0_5] : memref<1x1x1x640xi32, #tpu.memory_space<vmem>>, vector<1x1x1x640xi32>
    %3 = vector.shape_cast %2 : vector<1x1x1x640xi32> to vector<1x640xi32>
    %4 = tpu.iota {dimensions = array<i32: 0>} : vector<128x1xi32>
    %5 = vector.broadcast %4 : vector<128x1xi32> to vector<128x640xi32>
    %6 = vector.broadcast %3 : vector<1x640xi32> to vector<128x640xi32>
    %7 = arith.cmpi eq, %5, %6 : vector<128x640xi32>
    %8 = arith.extui %7 : vector<128x640xi1> to vector<128x640xi32>
    %9 = arith.sitofp %8 : vector<128x640xi32> to vector<128x640xf32>
    %cst = arith.constant dense<0.000000e+00> : vector<4x640xf32>
    %10 = tpu.matmul %1, %9, %cst {dimension_numbers = #tpu.dot_dimension_numbers<[1], [0], [0], [1], [0, 0, 1, 1], [], []>} : vector<4x128xf32>, vector<128x640xf32>, vector<4x640xf32> -> vector<4x640xf32>
    %11 = vector.extract_strided_slice %10 {offsets = [0, 0], sizes = [4, 128], strides = [1, 1]} : vector<4x640xf32> to vector<4x128xf32>
    %12 = vector.extract_strided_slice %10 {offsets = [0, 128], sizes = [4, 128], strides = [1, 1]} : vector<4x640xf32> to vector<4x128xf32>
    %13 = vector.extract_strided_slice %10 {offsets = [0, 256], sizes = [4, 128], strides = [1, 1]} : vector<4x640xf32> to vector<4x128xf32>
    %14 = vector.extract_strided_slice %10 {offsets = [0, 384], sizes = [4, 128], strides = [1, 1]} : vector<4x640xf32> to vector<4x128xf32>
    %15 = vector.extract_strided_slice %10 {offsets = [0, 512], sizes = [4, 128], strides = [1, 1]} : vector<4x640xf32> to vector<4x128xf32>
    %16 = arith.addf %12, %14 : vector<4x128xf32>
    %17 = arith.addf %13, %15 : vector<4x128xf32>
    %18 = arith.subf %12, %14 : vector<4x128xf32>
    %19 = math.absf %18 : vector<4x128xf32>
    %20 = arith.subf %13, %15 : vector<4x128xf32>
    %21 = math.absf %20 : vector<4x128xf32>
    %22 = tpu.concatenate %11, %16, %17, %19, %21 in 0 : vector<4x128xf32>, vector<4x128xf32>, vector<4x128xf32>, vector<4x128xf32>, vector<4x128xf32> -> vector<20x128xf32>
    %c0_6 = arith.constant 0 : index
    %c0_7 = arith.constant 0 : index
    %c0_8 = arith.constant 0 : index
    %23 = vector.load %arg4[%c0_6, %c0_7, %c0_8] : memref<1x20x128xf32, #tpu.memory_space<vmem>>, vector<1x20x128xf32>
    %24 = vector.shape_cast %23 : vector<1x20x128xf32> to vector<20x128xf32>
    %25 = vector.shape_cast %22 : vector<20x128xf32> to vector<1x20x128xf32>
    tpu.vector_store %arg4[%c0_6, %c0_7, %c0_8], %25 {strides = array<i32>} : memref<1x20x128xf32, #tpu.memory_space<vmem>>, vector<1x20x128xf32>,
    return
  }
  func.func @transform_0(%arg0: i32, %arg1: i32) -> (i32, i32, i32, i32) {
    %c0_i32 = arith.constant 0 : i32
    %c0_i32_0 = arith.constant 0 : i32
    %c0_i32_1 = arith.constant 0 : i32
    return %arg0, %arg1, %c0_i32, %c0_i32_0 : i32, i32, i32, i32
  }
  func.func @transform_1(%arg0: i32, %arg1: i32) -> (i32, i32, i32) {
    %c0_i32 = arith.constant 0 : i32
    %c0_i32_0 = arith.constant 0 : i32
    %c0_i32_1 = arith.constant 0 : i32
    return %arg0, %c0_i32, %c0_i32_0 : i32, i32, i32
  }
  func.func @transform_2(%arg0: i32, %arg1: i32) -> (i32, i32, i32) {
    %c0_i32 = arith.constant 0 : i32
    %c0_i32_0 = arith.constant 0 : i32
    return %arg0, %c0_i32, %arg1 : i32, i32, i32
  }
}

</mosaic_0001>

<bundles_post_ra>
// kernel: tpu_custom_call.1
= control target key start
LH: loop header
LB: loop body
LE: loop exit
PB: predicated region body
PF: predicated region fallthrough
CT: control target
= control target key end

     0   :  { %7 = vsyncpa [#allocation3], 0  ;;  %s1799_s0 = inlined_call_operand.hbm [shape: s32[2,1,1,640], index: 0, kind: input, shape index: {}]   ;;  %s1800_s1 = inlined_call_operand.hbm [shape: f32[2,4,128], index: 1, kind: input, shape index: {}]   ;;  %s1801_s2 = inlined_call_operand.vmem [shape: f32[2,20,128], index: 2, kind: output, shape index: {}]  }
   0x1   :  { %9 = vsyncpa [#allocation3 + $0x1], 0 }
   0x2   :  { %10 = vsyncpa [#allocation5], 0 }
   0x3   :  { %12 = vsyncpa [#allocation5 + $0x1], 0  ;;  %s1364_s9 = smov 0   ;;  %s1366_s10 = smov 0  }
   0x4   :  { %s1368_s11 = smov 0   ;;  %s1370_s12 = smov 0  }
   0x5   :  { %s1372_s13 = smov 0   ;;  %s1374_s14 = smov 0  }
   0x6 LB: > { %s847_s15 = sadd.s32 4294967295, %s1341_s14   ;;  %s30_s16 = sadd.s32 1, %s1337_s13  ;;  %s1341_s14 = sphi %s1374_s14, %s18_s14   ;;  %s1337_s13 = sphi %s1372_s13, %s1814_s13   ;;  %s1333_s12 = sphi %s1370_s12, %s1813_s12   ;;  %s1329_s11 = sphi %s1368_s11, %s1812_s11   ;;  %s1325_s10 = sphi %s1366_s10, %s1811_s10   ;;  %s1321_s9 = sphi %s1364_s9, %s1810_s9  }
   0x7   : > { %p32_p0 = scmp.ge.s32.totalorder %s30_s16, 2  ;;  %s39_s17 = sadd.s32 1, %s1329_s11 }
   0x8   : > { %p46_p1 = scmp.ne.s32.totalorder %s1329_s11, %s1325_s10  ;;  %p47_p2 = scmp.eq.s32.totalorder %s1341_s14, 0 }
   0x9   : > { %s1816_s16 = smov (%p32_p0, %s30_s16), 0  ;;  %p52_p4 = scmp.ne.s32.totalorder %s1325_s10, %s1321_s9 }
   0xa   : > { %p48_p3 = por %p47_p2, %p46_p1  ;;  %s34_s18 = ssub.s32 %s1337_s13, %s1816_s16 }
   0xb   : > { %p53_p5 = scmp.eq.s32.totalorder %s847_s15, 0  ;;  %p37_p6 = scmp.eq.s32.totalorder %s34_s18, 0 }
   0xc   : > { %p1174_p8 = scmp.lt.s32.totalorder %s1341_s14, 2  ;;  %s1412_s21 = sand.u32 1, %s1329_s11  }
   0xd   : > { %p1403_p7 = por %p53_p5, %p52_p4  ;;  %s1160_s22 = smul.u32 80, %s1337_s13 }
   0xe   : > { %s1409_s20 = scalar_select %p37_p6, %s1329_s11, %s39_s17  }
   0xf   : > { %s1803_s19 = scalar_select %p1403_p7, 1, 0 }
  0x10   : > { %s1159_s23 = smul.u32 5, %s1412_s21  ;;  %s1419_s26 = scalar_lea.hbm %s1799_s0, %s1160_s22 }
  0x11   : > { %p1421_p9 = pnand %p1174_p8, %p48_p3  ;;  %s131_s30 = scalar_lea.sflag [#allocation3], %s1412_s21 }
  0x12   : > { %s134_s28 = scalar_lea.vmem [#allocation2], %s1159_s23  ;;  %s1227_s3 = scalar_lea.hbm %s1419_s26, 80 }
  0x13   : > { %s144_s29 = sshll.u32 %s134_s28, 4  ;;  %p1228_p12 = scmp.ne.s32.totalorder %s1419_s26, %s1227_s3  ;;  %s1426_s29 = int_to_ptr.vmem [resolvable:$true] %s144_s29 }
  0x14   : > { %p1229_p13 = pneg %p1421_p9  ;;  %s1232_s6 = scalar_lea.hbm %s1799_s0, 160 }
  0x15   : > { %p1233_p2 = scmp.lt.u32.totalorder %s1419_s26, %s1799_s0  ;;  %p1234_p3 = scmp.lt.u32.totalorder %s1232_s6, %s1227_s3 }
  0x16   : > { %p1230_p0 = pnand %p1229_p13, %p1228_p12  ;;  %p1236_p5 = scmp.lt.u32.totalorder %s1227_s3, %s1419_s26 }
  0x17   : > { %p1235_p4 = por %p1234_p3, %p1233_p2 }
  0x18   : > { %p1231_p1 = pneg %p1230_p0 }
  0x19   : > { %p1237_p6 = por %p1236_p5, %p1235_p4 }
  0x1b   : > { %p1238_p8 = pnand %p1237_p6, %p1231_p1 }
  0x1d   : > { %1241 = shalt.err (!%p1238_p8)
}
  0x1e   : > { %s1242_s9 = scalar_lea.vmem %s1426_s29, 80  ;;  %s1343_s15 = smov [#allocation2]  }
  0x1f   : > { %p1243_p12 = scmp.ne.s32.totalorder %s1426_s29, %s1242_s9  ;;  %s1247_s17 = sshll.u32 %s1343_s15, 4  ;;  %s1248_s17 = int_to_ptr.vmem [resolvable:$false] %s1247_s17 }
  0x20   : > { %s1249_s18 = scalar_lea.vmem %s1248_s17, 160  ;;  %p1250_p11 = scmp.lt.s32.totalorder %s1426_s29, %s1248_s17 }
  0x21   : > { %p1245_p0 = pnand %p1243_p12, %p1229_p13  ;;  %p1251_p2 = scmp.lt.s32.totalorder %s1249_s18, %s1242_s9 }
  0x23   : > { %p1246_p10 = pneg %p1245_p0  ;;  %p1252_p3 = por %p1251_p2, %p1250_p11 }
  0x25   : > { %p1253_p4 = pnand %p1252_p3, %p1246_p10 }
  0x27   : > { %1256 = shalt.err (!%p1253_p4)
}
  0x28   : > { %1170 = dma.hbm_to_vmem [thread:$0]  (!%p1421_p9), %s1419_s26, 80, %s1426_s29, %s131_s30  }
  0x29   : > { %p1805_p1 = scmp.lt.s32.totalorder %s1341_s14, 3  ;;  %p1806_p5 = scmp.ge.s32.totalorder %s1341_s14, 1 }
  0x2a   : > { %s852_s23 = sshll.u32 %s1412_s21, 2  ;;  %s853_s24 = sshll.u32 %s1337_s13, 6 }
  0x2b   : > { %p1459_p6 = pnand %p1806_p5, %p1805_p1  ;;  %s1468_s3 = scalar_lea.hbm %s1800_s1, %s853_s24 }
  0x2c   : > { %s155_s4 = scalar_lea.vmem [#allocation4], %s852_s23  ;;  %s152_s26 = scalar_lea.sflag [#allocation5], %s1412_s21 }
  0x2d   : > { %s1807_s22 = scalar_select %p1459_p6, 1, 0 }
  0x2e   : > { %s162_s5 = sshll.u32 %s155_s4, 4  ;;  %s1257_s29 = scalar_lea.hbm %s1468_s3, 64  ;;  %s163_s5 = int_to_ptr.vmem [resolvable:$true] %s162_s5 }
  0x2f   : > { %p1258_p10 = scmp.ne.s32.totalorder %s1468_s3, %s1257_s29  ;;  %s1262_s7 = scalar_lea.hbm %s1800_s1, 128 }
  0x30   : > { %p1263_p12 = scmp.lt.u32.totalorder %s1468_s3, %s1800_s1  ;;  %p1264_p0 = scmp.lt.u32.totalorder %s1262_s7, %s1257_s29 }
  0x31   : > { %p1260_p11 = pnand %p1258_p10, %p1229_p13  ;;  %p1266_p3 = scmp.lt.u32.totalorder %s1257_s29, %s1468_s3 }
  0x32   : > { %p1265_p2 = por %p1264_p0, %p1263_p12 }
  0x33   : > { %p1261_p8 = pneg %p1260_p11 }
  0x34   : > { %p1267_p4 = por %p1266_p3, %p1265_p2 }
  0x36   : > { %p1268_p1 = pnand %p1267_p4, %p1261_p8 }
  0x38   : > { %1271 = shalt.err (!%p1268_p1)
}
  0x39   : > { %s1272_s21 = scalar_lea.vmem %s163_s5, 64  ;;  %s1344_s15 = smov [#allocation4]  }
  0x3a   : > { %p1273_p5 = scmp.ne.s32.totalorder %s163_s5, %s1272_s21  ;;  %s1277_s17 = sshll.u32 %s1344_s15, 4  ;;  %s1278_s17 = int_to_ptr.vmem [resolvable:$false] %s1277_s17 }
  0x3b   : > { %s1279_s18 = scalar_lea.vmem %s1278_s17, 128  ;;  %p1280_p7 = scmp.lt.s32.totalorder %s163_s5, %s1278_s17 }
  0x3c   : > { %p1275_p10 = pnand %p1273_p5, %p1229_p13  ;;  %p1281_p6 = scmp.lt.s32.totalorder %s1279_s18, %s1272_s21 }
  0x3e   : > { %p1276_p11 = pneg %p1275_p10  ;;  %p1282_p0 = por %p1281_p6, %p1280_p7 }
  0x40   : > { %p1283_p12 = pnand %p1282_p0, %p1276_p11 }
  0x42   : > { %1286 = shalt.err (!%p1283_p12)
}
  0x43   : > { %1173 = dma.hbm_to_vmem [thread:$0]  (!%p1421_p9), %s1468_s3, 64, %s163_s5, %s152_s26  }
  0x44   : > { %p1808_p8 = scmp.ne.s32.totalorder %s1807_s22, 0 }
  0x45   : > { %s173_s23 = sand.u32 (!%p1808_p8), 1, %s1325_s10   ;;  %p1809_p13 = scmp.ne.s32.totalorder (!%p1808_p8), %s1803_s19, 0 }
  0x46   : > { %171 = sbr.rel (%p1808_p8) target bundleno = 373 (0x175), region = 28  ;;  %s174_s25 = scalar_lea.sflag (!%p1808_p8), [#allocation3], %s173_s23 }
  0x47   : > { %s1161_s24 = smul.u32 (!%p1808_p8), 5, %s173_s23 }
  0x49   : > { %s177_s28 = scalar_lea.vmem (!%p1808_p8), [#allocation2], %s1161_s24 }
  0x4d   : > { %1312 = dma.done.wait (%p1809_p13), %s174_s25, 80  }
  0x4e   : > { %1314 = vsyncadd (%p1809_p13), %s174_s25, 4294967216  ;;  %s855_s4 = sshll.u32 %s173_s23, 2  ;;  %s183_s29 = scalar_lea.sflag [#allocation5], %s173_s23 }
  0x4f   : > { %s1497_s27 = scalar_lea.vmem [#allocation4], %s855_s4 }
  0x50   : > { %1316 = dma.done.wait (%p1809_p13), %s183_s29, 64  }
  0x51   : > { %1318 = vsyncadd (%p1809_p13), %s183_s29, 4294967232  ;;  %v225_v0 = vlaneseq  ;;  %v1345_v1 = vmov 0.0   ;;  %v1514_v8 = vld [vmem:[%s177_s28] sm:$0x1f]  ;;  %v1346_v15 = vmov 1.0|1.0  }
  0x52   : > { %566 = vmatprep.mubr.f32.mxu0 %v1345_v1  ;;  %637 = vmatprep.mubr.f32.mxu1 %v1345_v1  ;;  %v223_v30 = vld [vmem:[%s1497_s27] sm:$0xf]  ;;  %v1347_v31 = vmov 0.0|0.0   ;;  %p215_p7 = scmp.lt.s32.totalorder %s1333_s12, 1 }
  0x53   : > { %v1505_v2 = vshrl.u32 %v225_v0, 7 }
  0x54   : > { %s1818_s12 = smov (!%p215_p7, %s1333_s12), 1 }
  0x55   : > { %v244_v3 = vsub.s32 0, %v1505_v2  ;;  %v248_v4 = vsub.s32 1, %v1505_v2  ;;  %v252_v5 = vsub.s32 2, %v1505_v2  ;;  %v256_v6 = vsub.s32 3, %v1505_v2  ;;  %s1162_s19 = smul.u32 24, %s1818_s12 }
  0x56   : > { %v1512_v7 = vadd.s32 8, %v1505_v2  ;;  %v1517_v9 = vadd.s32 16, %v1505_v2  ;;  %v1520_v10 = vadd.s32 24, %v1505_v2  ;;  %v1556_v16 = vadd.s32 32, %v1505_v2 }
  0x57   : > { %v1523_v11 = vrot.slane %v1514_v8, %v244_v3  ;;  %v1526_v12 = vrot.slane %v1514_v8, %v248_v4  ;;  %v1529_v13 = vrot.slane %v1514_v8, %v252_v5  ;;  %v1532_v14 = vrot.slane %v1514_v8, %v256_v6  ;;  %s222_s5 = scalar_lea.vmem %s1801_s2, %s1162_s19 }
  0x58   : > { %v1559_v17 = vadd.s32 40, %v1505_v2  ;;  %v1582_v18 = vadd.s32 48, %v1505_v2  ;;  %v1585_v19 = vadd.s32 56, %v1505_v2  ;;  %v1608_v20 = vadd.s32 64, %v1505_v2 }
  0x59   : > { %vm263_vm0 = vcmp.eq.s32.totalorder %v1505_v2, %v1526_v12  ;;  %vm268_vm1 = vcmp.eq.s32.totalorder %v1512_v7, %v1526_v12  ;;  %vm265_vm2 = vcmp.eq.s32.totalorder %v1505_v2, %v1532_v14  ;;  %vm270_vm3 = vcmp.eq.s32.totalorder %v1512_v7, %v1532_v14 }
  0x5a   : > { %vm1071_vm4 = vmpackc.low %vm268_vm1, %vm263_vm0  ;;  %vm262_vm5 = vcmp.eq.s32.totalorder %v1505_v2, %v1523_v11  ;;  %vm267_vm6 = vcmp.eq.s32.totalorder %v1512_v7, %v1523_v11  ;;  %vm264_vm7 = vcmp.eq.s32.totalorder %v1505_v2, %v1529_v13  ;;  %vm269_vm8 = vcmp.eq.s32.totalorder %v1512_v7, %v1529_v13 }
  0x5b   : > { %1072 = vmatprep.subr.msk.bf16.mxu0 %vm1071_vm4, %v1346_v15  ;;  %vm1103_vm9 = vmpackc.low %vm270_vm3, %vm265_vm2  ;;  %vm273_vm10 = vcmp.eq.s32.totalorder %v1517_v9, %v1526_v12  ;;  %vm278_vm11 = vcmp.eq.s32.totalorder %v1520_v10, %v1526_v12  ;;  %vm275_vm13 = vcmp.eq.s32.totalorder %v1517_v9, %v1532_v14  ;;  %vm280_vm14 = vcmp.eq.s32.totalorder %v1520_v10, %v1532_v14 }
  0x5c   : > { %1104 = vmatprep.subr.msk.bf16.mxu1 %vm1103_vm9, %v1346_v15  ;;  %vm1073_vm12 = vmpackc.low %vm267_vm6, %vm262_vm5  ;;  %vm272_vm0 = vcmp.eq.s32.totalorder %v1517_v9, %v1523_v11  ;;  %vm277_vm1 = vcmp.eq.s32.totalorder %v1520_v10, %v1523_v11  ;;  %vm274_vm3 = vcmp.eq.s32.totalorder %v1517_v9, %v1529_v13  ;;  %vm279_vm4 = vcmp.eq.s32.totalorder %v1520_v10, %v1529_v13 }
  0x5d   : > { %1074 = vmatpush1.bf16.msk.msra.mxu0 %vm1073_vm12, %v1346_v15  ;;  %vm1105_vm15 = vmpackc.low %vm269_vm8, %vm264_vm7  ;;  %vm283_vm6 = vcmp.eq.s32.totalorder %v1556_v16, %v1526_v12  ;;  %vm288_vm7 = vcmp.eq.s32.totalorder %v1559_v17, %v1526_v12  ;;  %vm285_vm9 = vcmp.eq.s32.totalorder %v1556_v16, %v1532_v14  ;;  %vm282_vm12 = vcmp.eq.s32.totalorder %v1556_v16, %v1523_v11 }
  0x5e   : > { %1106 = vmatpush1.bf16.msk.msra.mxu1 %vm1105_vm15, %v1346_v15  ;;  %vm1075_vm2 = vmpackc.low %vm278_vm11, %vm273_vm10  ;;  %vm290_vm10 = vcmp.eq.s32.totalorder %v1559_v17, %v1532_v14  ;;  %vm284_vm15 = vcmp.eq.s32.totalorder %v1556_v16, %v1529_v13  ;;  %v1611_v21 = vadd.s32 72, %v1505_v2  ;;  %v1634_v22 = vadd.s32 80, %v1505_v2 }
  0x5f   : > { %1076 = vmatprep.subr.msk.bf16.mxu0 %vm1075_vm2, %v1346_v15  ;;  %vm1107_vm5 = vmpackc.low %vm280_vm14, %vm275_vm13  ;;  %vm287_vm13 = vcmp.eq.s32.totalorder %v1559_v17, %v1523_v11  ;;  %vm293_vm2 = vcmp.eq.s32.totalorder %v1582_v18, %v1526_v12  ;;  %v1637_v23 = vadd.s32 88, %v1505_v2  ;;  %v1660_v24 = vadd.s32 96, %v1505_v2 }
  0x60   : > { %1108 = vmatprep.subr.msk.bf16.mxu1 %vm1107_vm5, %v1346_v15  ;;  %vm1077_vm8 = vmpackc.low %vm277_vm1, %vm272_vm0  ;;  %vm289_vm0 = vcmp.eq.s32.totalorder %v1559_v17, %v1529_v13  ;;  %vm295_vm5 = vcmp.eq.s32.totalorder %v1582_v18, %v1532_v14  ;;  %v1663_v25 = vadd.s32 104, %v1505_v2  ;;  %v260_v26 = vsub.s32 4, %v1505_v2 }
  0x61   : > { %1078 = vmatpush1.bf16.msk.msra.mxu0 %vm1077_vm8, %v1346_v15  ;;  %vm1109_vm11 = vmpackc.low %vm279_vm4, %vm274_vm3  ;;  %vm298_vm3 = vcmp.eq.s32.totalorder %v1585_v19, %v1526_v12  ;;  %vm292_vm8 = vcmp.eq.s32.totalorder %v1582_v18, %v1523_v11  ;;  %v1687_v27 = vadd.s32 112, %v1505_v2  ;;  %v1690_v28 = vadd.s32 120, %v1505_v2 }
  0x62   : > { %1110 = vmatpush1.bf16.msk.msra.mxu1 %vm1109_vm11, %v1346_v15  ;;  %vm1079_vm14 = vmpackc.low %vm288_vm7, %vm283_vm6  ;;  %vm300_vm6 = vcmp.eq.s32.totalorder %v1585_v19, %v1532_v14  ;;  %vm294_vm11 = vcmp.eq.s32.totalorder %v1582_v18, %v1529_v13  ;;  %v1708_v29 = vrot.slane %v1514_v8, %v260_v26 }
  0x63   : > { %1080 = vmatprep.subr.msk.bf16.mxu0 %vm1079_vm14, %v1346_v15  ;;  %vm1111_vm1 = vmpackc.low %vm290_vm10, %vm285_vm9  ;;  %vm297_vm9 = vcmp.eq.s32.totalorder %v1585_v19, %v1523_v11  ;;  %vm303_vm14 = vcmp.eq.s32.totalorder %v1608_v20, %v1526_v12 }
  0x64   : > { %1112 = vmatprep.subr.msk.bf16.mxu1 %vm1111_vm1, %v1346_v15  ;;  %vm1081_vm4 = vmpackc.low %vm287_vm13, %vm282_vm12  ;;  %vm299_vm12 = vcmp.eq.s32.totalorder %v1585_v19, %v1529_v13  ;;  %vm305_vm1 = vcmp.eq.s32.totalorder %v1608_v20, %v1532_v14 }
  0x65   : > { %1082 = vmatpush1.bf16.msk.msra.mxu0 %vm1081_vm4, %v1346_v15  ;;  %vm1113_vm7 = vmpackc.low %vm289_vm0, %vm284_vm15  ;;  %vm308_vm15 = vcmp.eq.s32.totalorder %v1611_v21, %v1526_v12  ;;  %vm302_vm4 = vcmp.eq.s32.totalorder %v1608_v20, %v1523_v11 }
  0x66   : > { %1114 = vmatpush1.bf16.msk.msra.mxu1 %vm1113_vm7, %v1346_v15  ;;  %vm1083_vm10 = vmpackc.low %vm298_vm3, %vm293_vm2  ;;  %vm310_vm2 = vcmp.eq.s32.totalorder %v1611_v21, %v1532_v14  ;;  %vm304_vm7 = vcmp.eq.s32.totalorder %v1608_v20, %v1529_v13 }
  0x67   : > { %1084 = vmatprep.subr.msk.bf16.mxu0 %vm1083_vm10, %v1346_v15  ;;  %vm1115_vm13 = vmpackc.low %vm300_vm6, %vm295_vm5  ;;  %vm307_vm5 = vcmp.eq.s32.totalorder %v1611_v21, %v1523_v11  ;;  %vm313_vm10 = vcmp.eq.s32.totalorder %v1634_v22, %v1526_v12 }
  0x68   : > { %1116 = vmatprep.subr.msk.bf16.mxu1 %vm1115_vm13, %v1346_v15  ;;  %vm1085_vm0 = vmpackc.low %vm297_vm9, %vm292_vm8  ;;  %vm309_vm8 = vcmp.eq.s32.totalorder %v1611_v21, %v1529_v13  ;;  %vm315_vm13 = vcmp.eq.s32.totalorder %v1634_v22, %v1532_v14 }
  0x69   : > { %1086 = vmatpush1.bf16.msk.msra.mxu0 %vm1085_vm0, %v1346_v15  ;;  %vm1117_vm3 = vmpackc.low %vm299_vm12, %vm294_vm11  ;;  %vm318_vm11 = vcmp.eq.s32.totalorder %v1637_v23, %v1526_v12  ;;  %vm312_vm0 = vcmp.eq.s32.totalorder %v1634_v22, %v1523_v11 }
  0x6a   : > { %1118 = vmatpush1.bf16.msk.msra.mxu1 %vm1117_vm3, %v1346_v15  ;;  %vm1087_vm6 = vmpackc.low %vm308_vm15, %vm303_vm14  ;;  %vm320_vm14 = vcmp.eq.s32.totalorder %v1637_v23, %v1532_v14  ;;  %vm314_vm3 = vcmp.eq.s32.totalorder %v1634_v22, %v1529_v13 }
  0x6b   : > { %1088 = vmatprep.subr.msk.bf16.mxu0 %vm1087_vm6, %v1346_v15  ;;  %vm1119_vm9 = vmpackc.low %vm310_vm2, %vm305_vm1  ;;  %vm317_vm1 = vcmp.eq.s32.totalorder %v1637_v23, %v1523_v11  ;;  %vm323_vm6 = vcmp.eq.s32.totalorder %v1660_v24, %v1526_v12 }
  0x6c   : > { %1120 = vmatprep.subr.msk.bf16.mxu1 %vm1119_vm9, %v1346_v15  ;;  %vm1089_vm12 = vmpackc.low %vm307_vm5, %vm302_vm4  ;;  %vm319_vm4 = vcmp.eq.s32.totalorder %v1637_v23, %v1529_v13  ;;  %vm325_vm9 = vcmp.eq.s32.totalorder %v1660_v24, %v1532_v14 }
  0x6d   : > { %1090 = vmatpush1.bf16.msk.msra.mxu0 %vm1089_vm12, %v1346_v15  ;;  %vm1121_vm15 = vmpackc.low %vm309_vm8, %vm304_vm7  ;;  %vm328_vm7 = vcmp.eq.s32.totalorder %v1663_v25, %v1526_v12  ;;  %vm322_vm12 = vcmp.eq.s32.totalorder %v1660_v24, %v1523_v11 }
  0x6e   : > { %1122 = vmatpush1.bf16.msk.msra.mxu1 %vm1121_vm15, %v1346_v15  ;;  %vm1091_vm2 = vmpackc.low %vm318_vm11, %vm313_vm10  ;;  %vm330_vm10 = vcmp.eq.s32.totalorder %v1663_v25, %v1532_v14  ;;  %vm324_vm15 = vcmp.eq.s32.totalorder %v1660_v24, %v1529_v13 }
  0x6f   : > { %1092 = vmatprep.subr.msk.bf16.mxu0 %vm1091_vm2, %v1346_v15  ;;  %vm1123_vm5 = vmpackc.low %vm320_vm14, %vm315_vm13  ;;  %vm327_vm13 = vcmp.eq.s32.totalorder %v1663_v25, %v1523_v11  ;;  %vm333_vm2 = vcmp.eq.s32.totalorder %v1687_v27, %v1526_v12 }
  0x70   : > { %1124 = vmatprep.subr.msk.bf16.mxu1 %vm1123_vm5, %v1346_v15  ;;  %vm1093_vm8 = vmpackc.low %vm317_vm1, %vm312_vm0  ;;  %vm329_vm0 = vcmp.eq.s32.totalorder %v1663_v25, %v1529_v13  ;;  %vm335_vm5 = vcmp.eq.s32.totalorder %v1687_v27, %v1532_v14 }
  0x71   : > { %1094 = vmatpush1.bf16.msk.msra.mxu0 %vm1093_vm8, %v1346_v15  ;;  %vm1125_vm11 = vmpackc.low %vm319_vm4, %vm314_vm3  ;;  %vm338_vm3 = vcmp.eq.s32.totalorder %v1690_v28, %v1526_v12  ;;  %vm332_vm8 = vcmp.eq.s32.totalorder %v1687_v27, %v1523_v11 }
  0x72   : > { %1126 = vmatpush1.bf16.msk.msra.mxu1 %vm1125_vm11, %v1346_v15  ;;  %vm1095_vm14 = vmpackc.low %vm328_vm7, %vm323_vm6  ;;  %vm340_vm6 = vcmp.eq.s32.totalorder %v1690_v28, %v1532_v14  ;;  %vm334_vm11 = vcmp.eq.s32.totalorder %v1687_v27, %v1529_v13 }
  0x73   : > { %1096 = vmatprep.subr.msk.bf16.mxu0 %vm1095_vm14, %v1346_v15  ;;  %vm1127_vm1 = vmpackc.low %vm330_vm10, %vm325_vm9  ;;  %vm337_vm9 = vcmp.eq.s32.totalorder %v1690_v28, %v1523_v11  ;;  %vm266_vm14 = vcmp.eq.s32.totalorder %v1505_v2, %v1708_v29 }
  0x74   : > { %1128 = vmatprep.subr.msk.bf16.mxu1 %vm1127_vm1, %v1346_v15  ;;  %vm1097_vm4 = vmpackc.low %vm327_vm13, %vm322_vm12  ;;  %vm339_vm12 = vcmp.eq.s32.totalorder %v1690_v28, %v1529_v13 }
  0x75   : > { %1098 = vmatpush1.bf16.msk.msra.mxu0 %vm1097_vm4, %v1346_v15  ;;  %vm1129_vm7 = vmpackc.low %vm329_vm0, %vm324_vm15  ;;  %vm271_vm15 = vcmp.eq.s32.totalorder %v1512_v7, %v1708_v29  ;;  %vm281_vm4 = vcmp.eq.s32.totalorder %v1520_v10, %v1708_v29 }
  0x76   : > { %1130 = vmatpush1.bf16.msk.msra.mxu1 %vm1129_vm7, %v1346_v15  ;;  %vm1099_vm10 = vmpackc.low %vm338_vm3, %vm333_vm2  ;;  %vm276_vm3 = vcmp.eq.s32.totalorder %v1517_v9, %v1708_v29  ;;  %vm286_vm7 = vcmp.eq.s32.totalorder %v1556_v16, %v1708_v29 }
  0x77   : > { %1100 = vmatprep.subr.msk.bf16.mxu0 %vm1099_vm10, %v1346_v15  ;;  %vm1131_vm13 = vmpackc.low %vm340_vm6, %vm335_vm5  ;;  %vm1348_vm6 = vmmov 0   ;;  %vm296_vm10 = vcmp.eq.s32.totalorder %v1582_v18, %v1708_v29 }
  0x78   : > { %1132 = vmatprep.subr.msk.bf16.mxu1 %vm1131_vm13, %v1346_v15  ;;  %vm1101_vm0 = vmpackc.low %vm337_vm9, %vm332_vm8  ;;  %vm291_vm8 = vcmp.eq.s32.totalorder %v1559_v17, %v1708_v29  ;;  %vm306_vm13 = vcmp.eq.s32.totalorder %v1608_v20, %v1708_v29 }
  0x79   : > { %1102 = vmatpush1.bf16.msk.msra.mxu0 %vm1101_vm0, %v1346_v15  ;;  %vm1133_vm1 = vmpackc.low %vm339_vm12, %vm334_vm11  ;;  %vm301_vm11 = vcmp.eq.s32.totalorder %v1585_v19, %v1708_v29  ;;  %vm316_vm0 = vcmp.eq.s32.totalorder %v1634_v22, %v1708_v29 }
  0x7a   : > { %1134 = vmatpush1.bf16.msk.msra.mxu1 %vm1133_vm1, %v1346_v15  ;;  %1135 = vmatprep.subr.bf16.mxu0 %v1347_v31  ;;  %vm1136_vm2 = vmpackc.low %vm271_vm15, %vm266_vm14  ;;  %vm311_vm14 = vcmp.eq.s32.totalorder %v1611_v21, %v1708_v29  ;;  %vm321_vm1 = vcmp.eq.s32.totalorder %v1637_v23, %v1708_v29 }
  0x7b   : > { %vm1139_vm5 = vmpackc.low %vm281_vm4, %vm276_vm3  ;;  %vm326_vm3 = vcmp.eq.s32.totalorder %v1660_v24, %v1708_v29  ;;  %vm331_vm4 = vcmp.eq.s32.totalorder %v1663_v25, %v1708_v29 }
  0x7c   : > { %567 = vmatmul.mubr.f32.vlgmr.msra.gmra.mrb[0].mxu0 %v223_v30  ;;  %vm1142_vm9 = vmpackc.low %vm291_vm8, %vm286_vm7  ;;  %vm341_vm7 = vcmp.eq.s32.totalorder %v1690_v28, %v1708_v29 }
  0x7d   : > { %638 = vmatmul.mubr.f32.vlgmr.msra.gmra.mrb[0].mxu1 %v223_v30  ;;  %1137 = vmatpush3.bf16.msk.msra.mxu0 %vm1136_vm2, %v1346_v15  ;;  %vm1145_vm12 = vmpackc.low %vm301_vm11, %vm296_vm10 }
  0x7e   : > { %1138 = vmatprep.subr.bf16.mxu0 %v1347_v31  ;;  %1068 = vmatprep.mubr.msk.f32.mxu0 %vm1348_vm6, %v1345_v1  ;;  %vm1148_vm15 = vmpackc.low %vm311_vm14, %vm306_vm13  ;;  %vm336_vm6 = vcmp.eq.s32.totalorder %v1687_v27, %v1708_v29 }
  0x7f   : > { %vm1151_vm2 = vmpackc.low %vm321_vm1, %vm316_vm0 }
  0x80   : > { %vm1157_vm8 = vmpackc.low %vm341_vm7, %vm336_vm6 }
  0x81   : > { %1140 = vmatpush3.bf16.msk.msra.mxu0 %vm1139_vm5, %v1346_v15  ;;  %vm1154_vm5 = vmpackc.low %vm331_vm4, %vm326_vm3 }
  0x82   : > { %1141 = vmatprep.subr.bf16.mxu0 %v1347_v31 }
  0x85   : > { %1143 = vmatpush3.bf16.msk.msra.mxu0 %vm1142_vm9, %v1346_v15  ;;  %vm726_vm9 = vcmask 1043456  }
  0x86   : > { %1144 = vmatprep.subr.bf16.mxu0 %v1347_v31 }
  0x89   : > { %1146 = vmatpush3.bf16.msk.msra.mxu0 %vm1145_vm12, %v1346_v15 }
  0x8a   : > { %1147 = vmatprep.subr.bf16.mxu0 %v1347_v31 }
  0x8d   : > { %1149 = vmatpush3.bf16.msk.msra.mxu0 %vm1148_vm15, %v1346_v15 }
  0x8e   : > { %1150 = vmatprep.subr.bf16.mxu0 %v1347_v31 }
  0x91   : > { %1152 = vmatpush3.bf16.msk.msra.mxu0 %vm1151_vm2, %v1346_v15 }
  0x92   : > { %1153 = vmatprep.subr.bf16.mxu0 %v1347_v31 }
  0x95   : > { %1155 = vmatpush3.bf16.msk.msra.mxu0 %vm1154_vm5, %v1346_v15 }
  0x96   : > { %1156 = vmatprep.subr.bf16.mxu0 %v1347_v31 }
  0x99   : > { %1158 = vmatpush3.bf16.msk.msra.mxu0 %vm1157_vm8, %v1346_v15 }
  0x9c   : > { %1069 = vmatmul.mubr.f32.vlgmr.msra.gmra.mrb[2].mxu0 %v223_v30 }
 0x14f   : > { %v568_v32 = vpop.f32.mrb[0].mxu0 }
 0x150   : > { %v639_v33 = vpop.f32.mrb[0].mxu1  ;;  %v570_v34 = vpop.f32.mrb[1].mxu0 }
 0x151   : > { %v641_v35 = vpop.f32.mrb[1].mxu1 }
 0x152   : > { %v714_v36 = vadd.f32 %v641_v35, %v570_v34  ;;  %v716_v37 = vsub.f32 %v570_v34, %v641_v35 }
 0x154   : > { %v721_v38 = vrot.slane %v714_v36, 4  ;;  %v717_v40 = vand.u32 2147483647, %v716_v37 }
 0x156   : > { %v727_v39 = vsel %vm726_vm9, %v568_v32, %v721_v38  ;;  %v724_v42 = vrot.slane %v717_v40, 4 }
 0x157   : > { %729 = vst [vmem:[%s222_s5] sm:$0xff] %v727_v39 }
 0x16f   : > { %v710_v41 = vpop.f32.mrb[2].mxu0 }
 0x170   : > { %v715_v43 = vadd.f32 %v710_v41, %v639_v33  ;;  %v718_v44 = vsub.f32 %v639_v33, %v710_v41  ;;  %v1070_v45 = vpop.f32.mrb[3].mxu0 }
 0x172   : > { %v719_v46 = vand.u32 2147483647, %v718_v44  ;;  %v728_v47 = vsel %vm726_vm9, %v715_v43, %v724_v42 }
 0x173   : > { %730 = vst [vmem:[%s222_s5 + $0x8] sm:$0xff] %v728_v47 }
 0x174   : > { %731 = vst [vmem:[%s222_s5 + $0x10] sm:$0xf] %v719_v46 }
 0x175 PF: > { %s18_s14 = sadd.s32 1, %s1341_s14   ;;  %s1810_s9 = smov %s1325_s10 }
 0x176   : > { %p15_p9 = scmp.ge.s32.totalorder %s18_s14, 4   ;;  %s1811_s10 = smov %s1329_s11 }
 0x177   : > { %s1812_s11 = smov %s1409_s20  ;;  %s1813_s12 = smov %s1337_s13 }
 0x178   : > { %s1814_s13 = smov %s1816_s16  ;;  %17 = sbr.rel (!%p15_p9) target bundleno = 6 (0x6), region = 81 }
 0x17f   :  { %759 = vsyncpa [#allocation3], 1 }
 0x180   :  { %761 = vsyncpa [#allocation3 + $0x1], 1 }
 0x181   :  { %762 = vsyncpa [#allocation5], 1 }
 0x182   :  { %764 = vsyncpa [#allocation5 + $0x1], 1 }

</bundles_post_ra>
